<compile_context>
chip_gen: v7x
topology: tpu7x:2x2x1
jax: 0.10.0
libtpu: 0.0.40
codegen_flags: <defaults>
</compile_context>

<pallas_src>
import functools

import jax
import jax.numpy as jnp
from jax.experimental import pallas as pl
from jax.experimental.pallas import tpu as pltpu


def _device_kind() -> str:
    try:
        return jax.devices()[0].device_kind.lower()
    except Exception:
        return ""


def _num_batch_partitions() -> int:
    # 2 resident accumulators (one per TensorCore) on multi-TC chips
    # (v7x, v4/v5p megacore); 1 on single-TC v5e/v6e so the partition axis
    # never degenerates into a wasteful sequential loop with duplicate DMAs.
    kind = _device_kind()
    if any(t in kind for t in ("v7", "v5p", "v4")):
        return 2
    return 1


def _keep_input_dtype_compute() -> bool:
    # v6e/v7x have native bf16 VALU: keep the compare/select in the input
    # dtype.  Older or unknown chips get a per-tile f32 upcast (always lowers).
    kind = _device_kind()
    return ("v6" in kind) or ("v7" in kind)


def _round_up(x: int, m: int) -> int:
    return ((x + m - 1) // m) * m


def _nll_sum_kernel(pred_ref, tgt_ref, part_ref, *, fold, upcast):
    """Accumulates sum_r pred[r, target[r]] for this partition's row blocks.

    pred_ref: (tile_nf, cf)   folded log-prob block (input dtype)
    tgt_ref : (tile_nf, fold) int32 flat lane index per (folded row, sub-slot),
                              or -1 for rows that must not contribute.
    part_ref: (1, 8, 128)     f32 accumulator tile, resident across the
                              "arbitrary" axis (full-width stores only).
    """
    i = pl.program_id(1)

    @pl.when(i == 0)
    def _init():
        part_ref[...] = jnp.zeros_like(part_ref)

    pred = pred_ref[...]
    if upcast and pred.dtype != jnp.float32:
        pred = pred.astype(jnp.float32)     # v5e-safe path (no bf16 VALU there)
    tgt = tgt_ref[...]                       # (tile_nf, fold) int32

    tnf, cf = pred.shape
    col_ids = jax.lax.broadcasted_iota(jnp.int32, (tnf, cf), 1)

    # Fused compare(+OR)+select gather: one comparison per folded sub-slot,
    # broadcasting a (tile_nf, 1) target column across the lanes.  -1 targets
    # never match the non-negative lane iota, so padded / duplicate /
    # out-of-range rows contribute exactly 0.
    mask = col_ids == tgt[:, 0:1]
    for j in range(1, fold):
        mask = jnp.logical_or(mask, col_ids == tgt[:, j:j + 1])
    sel = jnp.where(mask, pred, jnp.zeros_like(pred))

    # Lane reduction straight into f32 (exact: <= fold non-zeros per folded
    # row, each upcast before accumulation), then a sublane reduce to (1, 1),
    # broadcast-added into the full (8, 128) accumulator tile.
    psum = jnp.sum(sel, axis=1, keepdims=True, dtype=jnp.float32)   # (tnf, 1)
    total = jnp.sum(psum, axis=0, keepdims=True)                    # (1, 1)
    part_ref[...] = part_ref[...] + total


def get_loss_pallas(pred, target, trans_feat=None, *, tile_rows=None):
    """Pallas TPU get_loss.forward: mean NLL loss over (N, C) log-probs.

    Matches torch.nn.functional.nll_loss(pred, target) (mean reduction, no
    weights).  Out-of-range / negative targets contribute 0 (PyTorch raises);
    ignore_index is not supported.  `tile_rows` is the number of original
    batch rows per streamed block (auto-sized to ~4 MiB of pred if None).
    """
    del trans_feat  # unused by the reference module
    n, c = pred.shape
    itemsize = jnp.dtype(pred.dtype).itemsize

    # ---- Row folding for small class counts (C < 128) ----------------------
    fold = 1
    if c < 128:
        for cand in range(min(128 // c, 16), 1, -1):
            if n % cand == 0:
                fold = cand
                break
    nf = n // fold
    cf = fold * c
    pred_f = pred.reshape(nf, cf)            # free: row-major contiguous view

    # Flat lane index of each row's target inside its folded row (tiny fused
    # XLA ops on N int32s); invalid targets -> -1 (contribute 0).
    tgt = target.astype(jnp.int32).reshape(n)
    rows = jnp.arange(n, dtype=jnp.int32)
    flat_t = jnp.where((tgt >= 0) & (tgt < c), (rows % fold) * c + tgt, -1)

    # ---- Tile sizing: budget from the pred block only -----------------------
    sublane = {4: 8, 2: 16, 1: 32}.get(itemsize, 8)
    pred_row_vmem = _round_up(cf, 128) * itemsize   # lane-padded bytes / folded row
    if tile_rows is None:
        budget = 4 * 1024 * 1024                    # ~4 MiB pred block per step
        tile_nf = max(sublane, budget // pred_row_vmem)
    else:
        tile_nf = max(1, int(tile_rows) // fold)
    tile_nf = min(tile_nf, nf)
    if tile_nf < nf:                                # (8,128) / dtype packing rule
        tile_nf = min(nf, max(sublane, (tile_nf // sublane) * sublane))

    num_blocks = pl.cdiv(nf, tile_nf)
    num_parts = max(1, min(_num_batch_partitions(), num_blocks))
    blocks_per_part = pl.cdiv(num_blocks, num_parts)

    # Target padded to the full (possibly over-provisioned) grid so its
    # index_map never clamps: clamped duplicate *pred* blocks are neutralized
    # by their -1 targets.  Costs 4 bytes per padded row only.
    g_rows = num_parts * blocks_per_part * tile_nf * fold
    tgt_2d = jnp.pad(flat_t, (0, g_rows - n), constant_values=-1).reshape(
        num_parts * blocks_per_part * tile_nf, fold)

    def pred_idx(p, i):
        return (jnp.minimum(p * blocks_per_part + i, num_blocks - 1), 0)

    def tgt_idx(p, i):
        return (p * blocks_per_part + i, 0)

    # Double-buffered footprint (pred + target blocks) + headroom; kept under
    # v7x's 64 MiB physical VMEM.
    pred_block_vmem = _round_up(tile_nf, 32) * pred_row_vmem
    tgt_block_vmem = _round_up(tile_nf, 32) * 128 * 4
    vmem_limit = 2 * (pred_block_vmem + tgt_block_vmem) + (8 << 20)
    vmem_limit = int(min(max(vmem_limit, 32 << 20), 64 << 20))

    kernel = functools.partial(
        _nll_sum_kernel, fold=fold, upcast=not _keep_input_dtype_compute())

    partials = pl.pallas_call(
        kernel,
        out_shape=jax.ShapeDtypeStruct((num_parts, 8, 128), jnp.float32),
        grid=(num_parts, blocks_per_part),
        in_specs=[
            pl.BlockSpec((tile_nf, cf), pred_idx),     # pred, streamed over rows
            pl.BlockSpec((tile_nf, fold), tgt_idx),    # flat targets, same rows
        ],
        out_specs=pl.BlockSpec((1, 8, 128), lambda p, i: (p, 0, 0)),
        compiler_params=pltpu.CompilerParams(
            dimension_semantics=("parallel", "arbitrary"),
            vmem_limit_bytes=vmem_limit,
        ),
        cost_estimate=pl.CostEstimate(
            flops=2 * n * c,
            transcendentals=0,
            bytes_accessed=n * c * itemsize + 4 * g_rows + num_parts * 8 * 128 * 4,
        ),
    )(pred_f, tgt_2d)

    # Finalize once: combine per-core partials, negate, divide by the true N.
    return -jnp.sum(partials[:, 0, 0]) / jnp.float32(n)


if __name__ == "__main__":
    key = jax.random.PRNGKey(0)
    k_logits, k_target, k_logits2, k_target2 = jax.random.split(key, 4)

    # Small classification-head shapes: batch N = 8, num_classes C = 32.
    N, C = 8, 32
    logits = jax.random.normal(k_logits, (N, C), dtype=jnp.float32)
    pred = jax.nn.log_softmax(logits, axis=-1)           # nll_loss expects log-probs
    target = jax.random.randint(k_target, (N,), 0, C, dtype=jnp.int32)
    trans_feat = jnp.zeros((N, 3, 3), dtype=jnp.float32)  # unused, as in PyTorch

    loss = jax.block_until_ready(get_loss_pallas(pred, target, trans_feat))
    ref = -jnp.mean(pred[jnp.arange(N), target])
    assert jnp.allclose(loss, ref, atol=1e-5, rtol=1e-5), (loss, ref)

    # Exercises folding with k*C < 128 (C=40, k=3), multiple blocks, a partial
    # last block, and duplicate clamped blocks on a 2-way partition.
    N2, C2 = 300, 40
    logits2 = jax.random.normal(k_logits2, (N2, C2), dtype=jnp.float32)
    pred2 = jax.nn.log_softmax(logits2, axis=-1)
    target2 = jax.random.randint(k_target2, (N2,), 0, C2, dtype=jnp.int32)
    loss2 = jax.block_until_ready(get_loss_pallas(pred2, target2, None, tile_rows=64))
    ref2 = -jnp.mean(pred2[jnp.arange(N2), target2])
    assert jnp.allclose(loss2, ref2, atol=1e-4, rtol=1e-4), (loss2, ref2)

    # bf16 path: input-dtype compare/select on v6e/v7x, per-tile upcast elsewhere.
    pred3 = pred2.astype(jnp.bfloat16)
    loss3 = jax.block_until_ready(get_loss_pallas(pred3, target2, None, tile_rows=96))
    ref3 = -jnp.mean(pred3.astype(jnp.float32)[jnp.arange(N2), target2])
    assert jnp.allclose(loss3, ref3, atol=1e-2, rtol=1e-2), (loss3, ref3)

    print("KERNEL_OK")
</pallas_src>

<mosaic_0001>
module attributes {stable_mosaic.version = 11 : i64} {
  func.func @_nll_sum_kernel(%arg0: i32, %arg1: i32, %arg2: memref<2x128xf32, #tpu.memory_space<vmem>>, %arg3: memref<2x4xi32, #tpu.memory_space<vmem>>, %arg4: memref<1x8x128xf32, #tpu.memory_space<vmem>>) attributes {dimension_semantics = [#tpu.dimension_semantics<parallel>, #tpu.dimension_semantics<arbitrary>], iteration_bounds = array<i64: 1, 1>, scalar_prefetch = 0 : i64, scratch_operands = 0 : i64, tpu.core_type = #tpu.core_type<tc>, window_params = [{transform_indices = @transform_0, window_bounds = array<i64: 2, 128>}, {transform_indices = @transform_1, window_bounds = array<i64: 2, 4>}, {transform_indices = @transform_2, window_bounds = array<i64: 1, 8, 128>}]} {
    %c0_i32 = arith.constant 0 : i32
    %0 = arith.cmpi eq, %arg1, %c0_i32 : i32
    %1 = arith.extui %0 : i1 to i32
    %c0_i32_0 = arith.constant 0 : i32
    %2 = arith.cmpi ne, %1, %c0_i32_0 : i32
    scf.if %2 {
      %cst_12 = arith.constant 0.000000e+00 : f32
      %32 = vector.broadcast %cst_12 : f32 to vector<1x8x128xf32>
      %c0_13 = arith.constant 0 : index
      %c0_14 = arith.constant 0 : index
      %c0_15 = arith.constant 0 : index
      %33 = vector.load %arg4[%c0_13, %c0_14, %c0_15] : memref<1x8x128xf32, #tpu.memory_space<vmem>>, vector<1x8x128xf32>
      tpu.vector_store %arg4[%c0_13, %c0_14, %c0_15], %32 {strides = array<i32>} : memref<1x8x128xf32, #tpu.memory_space<vmem>>, vector<1x8x128xf32>,
    } else {
    }
    %c0 = arith.constant 0 : index
    %c0_1 = arith.constant 0 : index
    %3 = vector.load %arg2[%c0, %c0_1] : memref<2x128xf32, #tpu.memory_space<vmem>>, vector<2x128xf32>
    %c0_2 = arith.constant 0 : index
    %c0_3 = arith.constant 0 : index
    %4 = vector.load %arg3[%c0_2, %c0_3] : memref<2x4xi32, #tpu.memory_space<vmem>>, vector<2x4xi32>
    %5 = tpu.iota {dimensions = array<i32: 1>} : vector<2x128xi32>
    %6 = vector.extract_strided_slice %4 {offsets = [0, 0], sizes = [2, 1], strides = [1, 1]} : vector<2x4xi32> to vector<2x1xi32>
    %7 = vector.broadcast %6 : vector<2x1xi32> to vector<2x128xi32>
    %8 = arith.cmpi eq, %5, %7 : vector<2x128xi32>
    %9 = vector.extract_strided_slice %4 {offsets = [0, 1], sizes = [2, 1], strides = [1, 1]} : vector<2x4xi32> to vector<2x1xi32>
    %10 = vector.broadcast %9 : vector<2x1xi32> to vector<2x128xi32>
    %11 = arith.cmpi eq, %5, %10 : vector<2x128xi32>
    %12 = arith.ori %8, %11 : vector<2x128xi1>
    %13 = vector.extract_strided_slice %4 {offsets = [0, 2], sizes = [2, 1], strides = [1, 1]} : vector<2x4xi32> to vector<2x1xi32>
    %14 = vector.broadcast %13 : vector<2x1xi32> to vector<2x128xi32>
    %15 = arith.cmpi eq, %5, %14 : vector<2x128xi32>
    %16 = arith.ori %12, %15 : vector<2x128xi1>
    %17 = vector.extract_strided_slice %4 {offsets = [0, 3], sizes = [2, 1], strides = [1, 1]} : vector<2x4xi32> to vector<2x1xi32>
    %18 = vector.broadcast %17 : vector<2x1xi32> to vector<2x128xi32>
    %19 = arith.cmpi eq, %5, %18 : vector<2x128xi32>
    %20 = arith.ori %16, %19 : vector<2x128xi1>
    %cst = arith.constant 0.000000e+00 : f32
    %21 = vector.broadcast %cst : f32 to vector<2x128xf32>
    %22 = arith.select %20, %3, %21 : vector<2x128xi1>, vector<2x128xf32>
    %cst_4 = arith.constant dense<0.000000e+00> : vector<2xf32>
    %23 = vector.multi_reduction <add>, %22, %cst_4 [1] : vector<2x128xf32> to vector<2xf32>
    %24 = vector.shape_cast %23 : vector<2xf32> to vector<2x1xf32>
    %cst_5 = arith.constant dense<0.000000e+00> : vector<1xf32>
    %25 = vector.multi_reduction <add>, %24, %cst_5 [0] : vector<2x1xf32> to vector<1xf32>
    %26 = vector.shape_cast %25 : vector<1xf32> to vector<1x1xf32>
    %c0_6 = arith.constant 0 : index
    %c0_7 = arith.constant 0 : index
    %c0_8 = arith.constant 0 : index
    %27 = vector.load %arg4[%c0_6, %c0_7, %c0_8] : memref<1x8x128xf32, #tpu.memory_space<vmem>>, vector<1x8x128xf32>
    %28 = vector.shape_cast %26 : vector<1x1xf32> to vector<1x1x1xf32>
    %29 = vector.broadcast %28 : vector<1x1x1xf32> to vector<1x8x128xf32>
    %30 = arith.addf %27, %29 : vector<1x8x128xf32>
    %c0_9 = arith.constant 0 : index
    %c0_10 = arith.constant 0 : index
    %c0_11 = arith.constant 0 : index
    %31 = vector.load %arg4[%c0_9, %c0_10, %c0_11] : memref<1x8x128xf32, #tpu.memory_space<vmem>>, vector<1x8x128xf32>
    tpu.vector_store %arg4[%c0_9, %c0_10, %c0_11], %30 {strides = array<i32>} : memref<1x8x128xf32, #tpu.memory_space<vmem>>, vector<1x8x128xf32>,
    return
  }
  func.func @transform_0(%arg0: i32, %arg1: i32) -> (i32, i32) {
    %c1_i32 = arith.constant 1 : i32
    %0 = arith.muli %arg0, %c1_i32 : i32
    %1 = arith.addi %0, %arg1 : i32
    %c0_i32 = arith.constant 0 : i32
    %2 = arith.minsi %1, %c0_i32 : i32
    %c0_i32_0 = arith.constant 0 : i32
    %c0_i32_1 = arith.constant 0 : i32
    return %2, %c0_i32_0 : i32, i32
  }
  func.func @transform_1(%arg0: i32, %arg1: i32) -> (i32, i32) {
    %c1_i32 = arith.constant 1 : i32
    %0 = arith.muli %arg0, %c1_i32 : i32
    %1 = arith.addi %0, %arg1 : i32
    %c0_i32 = arith.constant 0 : i32
    %c0_i32_0 = arith.constant 0 : i32
    return %1, %c0_i32 : i32, i32
  }
  func.func @transform_2(%arg0: i32, %arg1: i32) -> (i32, i32, i32) {
    %c0_i32 = arith.constant 0 : i32
    %c0_i32_0 = arith.constant 0 : i32
    %c0_i32_1 = arith.constant 0 : i32
    return %arg0, %c0_i32, %c0_i32_0 : i32, i32, i32
  }
}

</mosaic_0001>

<bundles_post_ra>
// kernel: tpu_custom_call.1
= control target key start
LH: loop header
LB: loop body
LE: loop exit
PB: predicated region body
PF: predicated region fallthrough
CT: control target
= control target key end

     0   :  { %7 = vsyncpa [#allocation3], 0  ;;  %s223_s0 = inlined_call_operand.hbm [shape: f32[2,128], index: 0, kind: input, shape index: {}]   ;;  %s224_s1 = inlined_call_operand.vmem [shape: s32[2,4], index: 1, kind: input, shape index: {}]   ;;  %s225_s2 = inlined_call_operand.hbm [shape: f32[1,8,128], index: 2, kind: output, shape index: {}]  }
   0x1   :  { %8 = vsyncpa [#allocation4], 0  ;;  %s175_s9 = smov [#allocation2]   ;;  %s127_s13 = scalar_lea.hbm %s223_s0, 32 }
   0x2   :  { %s20_s10 = sshll.u32 %s175_s9, 4  ;;  %p128_p0 = scmp.ne.s32.totalorder %s223_s0, %s127_s13  ;;  %s21_s10 = int_to_ptr.vmem [resolvable:$true] %s20_s10 }
   0x3   :  { %p131_p1 = scmp.lt.u32.totalorder %s127_s13, %s223_s0 }
   0x5   :  { %p133_p2 = pnand %p131_p1, %p128_p0 }
   0x7   :  { %136 = shalt.err (!%p133_p2)
}
   0x8   :  { %s137_s18 = scalar_lea.vmem %s21_s10, 32  ;;  %p142_p4 = scmp.lt.s32.totalorder %s21_s10, %s21_s10 }
   0x9   :  { %p138_p3 = scmp.ne.s32.totalorder %s21_s10, %s137_s18  ;;  %p143_p5 = scmp.lt.s32.totalorder %s137_s18, %s137_s18 }
   0xb   :  { %p144_p6 = por %p143_p5, %p142_p4 }
   0xd   :  { %p145_p7 = pnand %p144_p6, %p138_p3 }
   0xf   :  { %148 = shalt.err (!%p145_p7)
}
  0x10   :  { %23 = dma.hbm_to_vmem [thread:$0]  %s223_s0, 32, %s21_s10, [#allocation3]  }
  0x11   :  { %171 = dma.done.wait [#allocation3], 32  }
  0x12   :  { %172 = vsyncadd [#allocation3], 4294967264  ;;  %v176_v0 = vmov 0   ;;  %v177_v1 = vmov 2   ;;  %v55_v2 = vld [vmem:[%s224_s1] sm:$0x3]  ;;  %v56_v5 = vlaneseq }
  0x13   :  { %122 = vset.pattern.permute.xlu0 %v176_v0  ;;  %124 = vset.pattern.permute.xlu1 %v177_v1  ;;  %v178_v3 = vmov 1   ;;  %v179_v4 = vmov 3   ;;  %v54_v11 = vld [vmem:[#allocation2] sm:$0x3]  ;;  %vm78_vm6 = vcmask 1041408   ;;  %s180_s0 = smov [#allocation5]  }
  0x14   :  { %59 = vperm.xlu0 %122, %v55_v2   ;;  %68 = vperm.xlu1 %124, %v55_v2   ;;  %v57_v8 = vand.u32 127, %v56_v5  ;;  %s98_s1 = sshll.u32 %s180_s0, 4  ;;  %s99_s1 = int_to_ptr.vmem [resolvable:$true] %s98_s1 }
  0x15   :  { %s149_s23 = scalar_lea.vmem %s99_s1, 128  ;;  %p154_p9 = scmp.lt.s32.totalorder %s99_s1, %s99_s1 }
  0x16   :  { %p150_p8 = scmp.ne.s32.totalorder %s99_s1, %s149_s23  ;;  %p155_p10 = scmp.lt.s32.totalorder %s149_s23, %s149_s23 }
  0x18   :  { %123 = vset.pattern.permute.xlu0 %v178_v3  ;;  %125 = vset.pattern.permute.xlu1 %v179_v4  ;;  %p156_p11 = por %p155_p10, %p154_p9 }
  0x19   :  { %63 = vperm.xlu0 %123, %v55_v2   ;;  %73 = vperm.xlu1 %125, %v55_v2  }
  0x1a   :  { %p157_p12 = pnand %p156_p11, %p150_p8 }
  0x1d   :  { %126 = vset.pattern.permute.xlu0 %v179_v4 }
  0x93   :  { %v60_v6 = vpop.permute.xlu0 %59  ;;  %v69_v7 = vpop.permute.xlu1 %68 }
  0x94   :  { %vm61_vm0 = vcmp.eq.s32.totalorder %v57_v8, %v60_v6  ;;  %vm70_vm3 = vcmp.eq.s32.totalorder %v57_v8, %v69_v7 }
  0x98   :  { %v64_v9 = vpop.permute.xlu0 %63  ;;  %v74_v10 = vpop.permute.xlu1 %73 }
  0x99   :  { %vm65_vm1 = vcmp.eq.s32.totalorder %v57_v8, %v64_v9  ;;  %vm75_vm2 = vcmp.eq.s32.totalorder %v57_v8, %v74_v10 }
  0x9a   :  { %vm66_vm4 = vmor %vm61_vm0, %vm65_vm1 }
  0x9b   :  { %vm71_vm5 = vmor %vm66_vm4, %vm70_vm3 }
  0x9c   :  { %vm76_vm7 = vmor %vm71_vm5, %vm75_vm2 }
  0x9d   :  { %v77_v12 = vsel %vm76_vm7, %v54_v11, 0.0 }
  0x9e   :  { %v79_v13 = vsel %vm78_vm6, %v77_v12, 0.0 }
  0x9f   :  { %80 = vadd.xlane.f32.xlu1 %v79_v13 }
 0x12c   :  { %v81_v14 = vpop.xlane.xlu1 %80 }
 0x12d   :  { %v82_v15 = vsel %vm78_vm6, %v81_v14, 0.0 }
 0x12e   :  { %v83_v16 = vrot.slane %v82_v15, 4 }
 0x130   :  { %v84_v17 = vadd.f32 %v83_v16, %v82_v15 }
 0x132   :  { %v85_v18 = vrot.slane %v84_v17, 2 }
 0x134   :  { %v86_v19 = vadd.f32 %v85_v18, %v84_v17 }
 0x136   :  { %v87_v20 = vrot.slane %v86_v19, 1 }
 0x138   :  { %v88_v21 = vadd.f32 %v87_v20, %v86_v19 }
 0x13a   :  { %91 = vst [vmem:[#allocation5] sm:$0xff] %v88_v21 }
 0x13b   :  { %160 = shalt.err (!%p157_p12)
}
 0x13c   :  { %s161_s26 = scalar_lea.hbm %s225_s2, 128 }
 0x13d   :  { %p162_p13 = scmp.ne.s32.totalorder %s225_s2, %s161_s26  ;;  %p165_p0 = scmp.lt.u32.totalorder %s161_s26, %s225_s2 }
 0x13f   :  { %p167_p1 = pnand %p165_p0, %p162_p13 }
 0x141   :  { %170 = shalt.err (!%p167_p1)
}
 0x142   :  { %101 = dma.vmem_to_hbm [thread:$0]  %s99_s1, 128, %s225_s2, [#allocation4]  }
 0x143   :  { %173 = dma.done.wait [#allocation4], 128  }
 0x144   :  { %174 = vsyncadd [#allocation4], 4294967168 }
 0x145   :  { %105 = vsyncpa [#allocation3], 1 }
 0x146   :  { %106 = vsyncpa [#allocation4], 1 }

</bundles_post_ra>
